<compile_context>
chip_gen: v6e
topology: v6e:2x2x1
jax: 0.10.0
libtpu: 0.0.40
codegen_flags: <defaults>
</compile_context>

<pallas_src>
import functools

import jax
import jax.numpy as jnp
from jax import lax
from jax.experimental import pallas as pl
from jax.experimental.pallas import tpu as pltpu

EPS = 1e-8          # torch.cosine_similarity eps
NEG_BIG = -1e30     # finite "minus infinity" for masked / initial LSE state


def _round_up(x, m):
    return ((x + m - 1) // m) * m


def _pick_vmem_limit():
    """~75% of physical VMEM (48 MiB on v7x, ~96 MiB on v5e/v6e), safe fallback."""
    cap = 64 * 1024 * 1024
    try:
        cap = int(pltpu.get_tpu_info().vmem_capacity_bytes)
    except Exception:
        pass
    return min((cap * 3) // 4, 100 * 1024 * 1024)


def _contrastive_kernel(z_ref, z0r_ref, pir_ref, ohr_ref,
                        z0cT_ref, dcatT_ref, cmaskadd_ref,
                        comT_ref, comhT_ref, wlogT_ref, blog_ref, wsimT_ref, bsim_ref,
                        mi1_ref, mi2_ref,
                        t_s, dcat_s, m_s, l_s, adiag_s,
                        *, apply_colmask):
    f32 = jnp.float32
    cdt = t_s.dtype                       # MXU operand dtype (f32 or bf16)
    dn = (((1,), (0,)), ((), ()))         # standard X @ Y contraction
    ki = pl.program_id(2)

    # ----------------- once per (manifold, row block): ki == 0 -----------------
    @pl.when(ki == 0)
    def _init():
        z = z_ref[0]                      # (T_r, D)  embeddings[mi+1] rows (cdt)
        z0r = z0r_ref[...]                # (T_r, D)  z0 rows (f32, diag terms)
        pir = pir_ref[...]                # (T_r, M)  pi rows (f32)
        M = pir.shape[-1]
        D = z.shape[-1]
        Kp = dcat_s.shape[-1]

        # Euclidean log map (curvature k == 0): logmap_0(z) = z.
        zlin = (lax.dot_general(z, wlogT_ref[0], dn, preferred_element_type=f32)
                + blog_ref[0])
        zm = z.astype(f32) * zlin                                      # (T_r, D) f32
        t = (lax.dot_general(zm.astype(cdt), wsimT_ref[...], dn,
                             preferred_element_type=f32) + bsim_ref[...])
        zm_hat = zm * lax.rsqrt(jnp.maximum(jnp.sum(zm * zm, -1, keepdims=True), EPS))

        tc = t.astype(cdt)
        t_s[...] = tc
        # Fused-matmul row operand: [pi | zm_hat | 0] over K = M + D (+ pad).
        parts = [pir, zm_hat]
        if Kp > M + D:
            parts.append(jnp.zeros((pir.shape[0], Kp - M - D), f32))
        dcat_s[...] = jnp.concatenate(parts, axis=-1).astype(cdt)

        # Diagonal (r == r) exponent of part 1, from row data only.
        z0r_hat = z0r * lax.rsqrt(jnp.maximum(jnp.sum(z0r * z0r, -1, keepdims=True), EPS))
        sim_rr = jnp.sum(t * z0r, -1, keepdims=True)
        d_rr = (jnp.sum(pir * pir, -1, keepdims=True)
                - jnp.sum(zm_hat * z0r_hat, -1, keepdims=True))
        adiag_s[...] = sim_rr * d_rr * d_rr

        # Running log-sum-exp state for the streamed row sums.
        m_s[...] = jnp.full(m_s.shape, NEG_BIG, m_s.dtype)
        l_s[...] = jnp.zeros(l_s.shape, l_s.dtype)

        # ---------- part 2: nodes vs. community centers (small (T_r, M)) ----------
        sim2 = lax.dot_general(tc, comT_ref[...], dn, preferred_element_type=f32)
        cos2 = lax.dot_general(zm_hat.astype(cdt), comhT_ref[...], dn,
                               preferred_element_type=f32)
        d2 = pir - cos2                   # pi @ I.T == pi
        a2 = sim2 * d2 * d2
        m2 = jnp.max(a2, -1, keepdims=True)
        lse2 = m2 + jnp.log(jnp.sum(jnp.exp(a2 - m2), -1, keepdims=True))
        a2_sel = jnp.sum(a2 * ohr_ref[...], -1, keepdims=True)   # argmax gather
        mi2_ref[0] = lse2 - a2_sel        # -log(p_c / rowsum), log domain

    # ------------- streamed column tile of part 1 (every ki) -------------
    simt = lax.dot_general(t_s[...], z0cT_ref[...], dn,
                           preferred_element_type=f32)             # (T_r, T_c)
    d = lax.dot_general(dcat_s[...], dcatT_ref[...], dn,
                        preferred_element_type=f32)                # pi pi^T - cos
    a = simt * d * d                      # exponent  sim * |pi pi^T - cos|^2
    if apply_colmask:                     # trace-time flag; single additive mask
        a = a + cmaskadd_ref[...]         # padded columns -> ~NEG_BIG

    m_prev = m_s[...]
    m_new = jnp.maximum(m_prev, jnp.max(a, -1, keepdims=True))
    l_s[...] = (jnp.exp(m_prev - m_new) * l_s[...]
                + jnp.sum(jnp.exp(a - m_new), -1, keepdims=True))
    m_s[...] = m_new

    @pl.when(ki == pl.num_programs(2) - 1)
    def _finalize():
        # -log(diag / rowsum) = logsumexp(row) - a_diag   (overflow-safe)
        mi1_ref[0] = m_s[...] + jnp.log(l_s[...]) - adiag_s[...]


def contrastive_forward(embeddings, community, curvatures, pi, params,
                        *, block_rows=256, block_cols=512,
                        matmul_dtype=jnp.bfloat16, column_buffers=2):
    """Forward pass of `Contrastive` (curvature == 0 / Euclidean manifolds)."""
    del curvatures  # TODO(synk): only curvature == 0 (Euclidean logmap) supported.
    f32 = jnp.float32
    cdt = matmul_dtype

    num_manifold, N, D = embeddings.shape
    Mm1 = num_manifold - 1
    M = community.shape[0]
    wlog, blog, wsim, bsim = params

    # Row tile (sublane axis) and column tile (lane axis) are decoupled.
    T_r = max(8, min(_round_up(block_rows, 8), _round_up(N, 8)))
    N_pad_r = _round_up(N, T_r)
    T_c = max(128, min(_round_up(block_cols, 128), _round_up(N, 128)))
    N_pad_c = _round_up(N, T_c)
    pad_r = N_pad_r - N
    pad_c = N_pad_c - N
    Nq_r = N_pad_r // T_r
    Nq_c = N_pad_c // T_c
    K_pad = _round_up(M + D, 8)           # fused-matmul contraction depth

    z0 = embeddings[0].astype(f32)
    zrest = embeddings[1:].astype(f32)
    pi_f = pi.astype(f32)
    com = community.astype(f32)

    # ---- grid-invariant precomputation, hoisted out of the kernel ----
    z0_hat = z0 * lax.rsqrt(jnp.maximum(jnp.sum(z0 * z0, -1, keepdims=True), EPS))
    com_hat = com * lax.rsqrt(jnp.maximum(jnp.sum(com * com, -1, keepdims=True), EPS))
    onehot = jax.nn.one_hot(jnp.argmax(pi_f, axis=-1), M, dtype=f32)

    # Row-indexed operands (padded along rows).
    def rp(x):
        return jnp.pad(x, ((0, pad_r), (0, 0))) if pad_r else x
    zrest_p = (jnp.pad(zrest, ((0, 0), (0, pad_r), (0, 0))) if pad_r else zrest).astype(cdt)
    z0r_p = rp(z0)                        # f32 (diag terms)
    pir_p = rp(pi_f)                      # f32 (diag, part2, fused-row operand)
    ohr_p = rp(onehot)                    # f32

    # Column-streamed operands: lane-dense (K, N_pad_c) layout, cdt.
    def cp(x):
        return jnp.pad(x, ((0, 0), (0, pad_c))) if pad_c else x
    z0T_c = cp(z0.T).astype(cdt)                                   # (D, Nc)
    dcat_rows = [pi_f.T, -z0_hat.T]
    if K_pad > M + D:
        dcat_rows.append(jnp.zeros((K_pad - M - D, N), f32))
    dcatT_c = cp(jnp.concatenate(dcat_rows, axis=0)).astype(cdt)   # (K_pad, Nc)
    colmask_add = jnp.where(jnp.arange(N_pad_c) < N, 0.0, NEG_BIG
                            ).astype(f32).reshape(1, N_pad_c)

    # Parameters, pre-transposed so every in-kernel dot is standard X @ Y.
    wlogT_c = jnp.transpose(wlog.astype(f32), (0, 2, 1)).astype(cdt)   # (Mm1, D, D)
    blog3 = blog.astype(f32).reshape(Mm1, 1, D)
    wsimT_c = wsim.astype(f32).T.astype(cdt)                           # (D, D)
    bsim2 = bsim.astype(f32).reshape(1, D)
    comT_c = com.T.astype(cdt)                                         # (D, M)
    comhT_c = com_hat.T.astype(cdt)                                    # (D, M)

    grid = (Mm1, Nq_r, Nq_c)

    def _col_spec(shape, index_map):
        # Deeper pipelining of the column stream (v5e: column_buffers=3 hides
        # exposed DMA of the Nq_r-fold re-read).  Falls back to default buffering.
        if column_buffers and column_buffers > 2:
            try:
                return pl.BlockSpec(shape, index_map,
                                    pipeline_mode=pl.Buffered(column_buffers))
            except Exception:
                pass
        return pl.BlockSpec(shape, index_map)

    kernel = functools.partial(_contrastive_kernel, apply_colmask=pad_c > 0)

    mi1, mi2 = pl.pallas_call(
        kernel,
        out_shape=(jax.ShapeDtypeStruct((Mm1, N_pad_r, 1), f32),
                   jax.ShapeDtypeStruct((Mm1, N_pad_r, 1), f32)),
        grid_spec=pltpu.PrefetchScalarGridSpec(
            num_scalar_prefetch=0,
            grid=grid,
            in_specs=[
                pl.BlockSpec((1, T_r, D), lambda mi, qi, ki: (mi, qi, 0)),  # z rows (cdt)
                pl.BlockSpec((T_r, D),    lambda mi, qi, ki: (qi, 0)),      # z0 rows (f32)
                pl.BlockSpec((T_r, M),    lambda mi, qi, ki: (qi, 0)),      # pi rows
                pl.BlockSpec((T_r, M),    lambda mi, qi, ki: (qi, 0)),      # one-hot rows
                _col_spec((D, T_c),       lambda mi, qi, ki: (0, ki)),      # z0^T cols
                _col_spec((K_pad, T_c),   lambda mi, qi, ki: (0, ki)),      # [pi;-z0_hat]^T
                pl.BlockSpec((1, T_c),    lambda mi, qi, ki: (0, ki)),      # additive mask
                pl.BlockSpec((D, M),      lambda mi, qi, ki: (0, 0)),       # community^T
                pl.BlockSpec((D, M),      lambda mi, qi, ki: (0, 0)),       # community_hat^T
                pl.BlockSpec((1, D, D),   lambda mi, qi, ki: (mi, 0, 0)),   # W_log[mi]^T
                pl.BlockSpec((1, 1, D),   lambda mi, qi, ki: (mi, 0, 0)),   # b_log[mi]
                pl.BlockSpec((D, D),      lambda mi, qi, ki: (0, 0)),       # W_sim^T
                pl.BlockSpec((1, D),      lambda mi, qi, ki: (0, 0)),       # b_sim
            ],
            out_specs=[
                pl.BlockSpec((1, T_r, 1), lambda mi, qi, ki: (mi, qi, 0)),  # MI
                pl.BlockSpec((1, T_r, 1), lambda mi, qi, ki: (mi, qi, 0)),  # MI_c
            ],
            scratch_shapes=[
                pltpu.VMEM((T_r, D), cdt),       # t = linear_sim(zm)   (per row block)
                pltpu.VMEM((T_r, K_pad), cdt),   # [pi | zm_hat | 0]    (fused-row op)
                pltpu.VMEM((T_r, 1), f32),       # running max  m
                pltpu.VMEM((T_r, 1), f32),       # running sum  l
                pltpu.VMEM((T_r, 1), f32),       # diagonal exponent a_rr
            ]),
        compiler_params=pltpu.CompilerParams(
            dimension_semantics=("parallel", "parallel", "arbitrary"),
            vmem_limit_bytes=_pick_vmem_limit()),
    )(zrest_p, z0r_p, pir_p, ohr_p, z0T_c, dcatT_c, colmask_add,
      comT_c, comhT_c, wlogT_c, blog3, wsimT_c, bsim2)

    mi1 = mi1[:, :N, 0]
    mi2 = mi2[:, :N, 0]
    return mi1.mean() + mi2.mean()


def reference_forward(embeddings, community, curvatures, pi, params):
    """Pure-JAX reference mirroring the PyTorch forward (Euclidean logmap)."""
    del curvatures
    wlog, blog, wsim, bsim = params
    z0 = embeddings[0]
    num_manifold = embeddings.shape[0]
    mi1s, mi2s = [], []
    for i in range(num_manifold - 1):
        z = embeddings[i + 1]
        zm = z * (z @ wlog[i].T + blog[i])
        t = zm @ wsim.T + bsim
        # part 1: node-node
        sim1 = t @ z0.T
        den1 = (jnp.linalg.norm(zm, axis=-1)[:, None]
                * jnp.linalg.norm(z0, axis=-1)[None, :])
        cos1 = (zm @ z0.T) / jnp.maximum(den1, EPS)
        coe1 = jnp.abs(pi @ pi.T - cos1) ** 2
        pe1 = jnp.exp(sim1 * coe1)
        mi1s.append(-jnp.log(jnp.diag(pe1) / pe1.sum(-1)))
        # part 2: node-community
        sim2 = t @ community.T
        den2 = (jnp.linalg.norm(zm, axis=-1)[:, None]
                * jnp.linalg.norm(community, axis=-1)[None, :])
        cos2 = (zm @ community.T) / jnp.maximum(den2, EPS)
        coe2 = jnp.abs(pi - cos2) ** 2
        pe2 = jnp.exp(sim2 * coe2)
        arg = jnp.argmax(pi, axis=-1)
        p_c = jnp.take_along_axis(pe2, arg[:, None], axis=-1)[:, 0]
        mi2s.append(-jnp.log(p_c / pe2.sum(-1)))
    return jnp.stack(mi1s).mean() + jnp.stack(mi2s).mean()


if __name__ == "__main__":
    key = jax.random.PRNGKey(0)
    D, N, num_manifold = 32, 8, 3
    ks = jax.random.split(key, 7)

    embeddings = jax.random.normal(ks[0], (num_manifold, N, D), jnp.float32)
    community = jax.random.normal(ks[1], (num_manifold, D), jnp.float32)
    pi = jax.nn.softmax(jax.random.normal(ks[2], (N, num_manifold), jnp.float32), axis=-1)
    curvatures = jnp.zeros((num_manifold,), jnp.float32)   # all Euclidean (k = 0)

    wlog = 0.1 * jax.random.normal(ks[3], (num_manifold - 1, D, D), jnp.float32)
    blog = 0.1 * jax.random.normal(ks[4], (num_manifold - 1, D), jnp.float32)
    wsim = 0.1 * jax.random.normal(ks[5], (D, D), jnp.float32)
    bsim = 0.1 * jax.random.normal(ks[6], (D,), jnp.float32)
    params = (wlog, blog, wsim, bsim)

    ref = reference_forward(embeddings, community, curvatures, pi, params)

    # f32 MXU operands: tight check.
    out = contrastive_forward(embeddings, community, curvatures, pi, params,
                              matmul_dtype=jnp.float32)
    out = jax.block_until_ready(out)
    assert jnp.allclose(out, ref, rtol=5e-3, atol=5e-3), (out, ref)

    # bf16 MXU operands (f32 accumulation, init matmuls included): looser check.
    out_bf16 = contrastive_forward(embeddings, community, curvatures, pi, params,
                                   matmul_dtype=jnp.bfloat16)
    out_bf16 = jax.block_until_ready(out_bf16)
    assert jnp.allclose(out_bf16, ref, rtol=5e-2, atol=5e-2), (out_bf16, ref)

    # Larger multi-tile case: several row blocks, several streamed column tiles,
    # and a partially padded last column tile (exercises the additive mask).
    N2 = 300
    ks2 = jax.random.split(jax.random.PRNGKey(1), 3)
    embeddings2 = jax.random.normal(ks2[0], (num_manifold, N2, D), jnp.float32)
    pi2 = jax.nn.softmax(jax.random.normal(ks2[1], (N2, num_manifold), jnp.float32), axis=-1)
    community2 = jax.random.normal(ks2[2], (num_manifold, D), jnp.float32)
    ref2 = reference_forward(embeddings2, community2, curvatures, pi2, params)
    out2 = contrastive_forward(embeddings2, community2, curvatures, pi2, params,
                               block_rows=128, block_cols=128,
                               matmul_dtype=jnp.float32)
    out2 = jax.block_until_ready(out2)
    assert jnp.allclose(out2, ref2, rtol=5e-3, atol=5e-3), (out2, ref2)

    print("KERNEL_OK")
</pallas_src>

<mosaic_0001>
module attributes {stable_mosaic.version = 11 : i64} {
  func.func @_contrastive_kernel(%arg0: i32, %arg1: i32, %arg2: i32, %arg3: memref<1x8x32xf32, #tpu.memory_space<vmem>>, %arg4: memref<8x32xf32, #tpu.memory_space<vmem>>, %arg5: memref<8x3xf32, #tpu.memory_space<vmem>>, %arg6: memref<8x3xf32, #tpu.memory_space<vmem>>, %arg7: memref<32x128xf32, #tpu.memory_space<vmem>>, %arg8: memref<40x128xf32, #tpu.memory_space<vmem>>, %arg9: memref<1x128xf32, #tpu.memory_space<vmem>>, %arg10: memref<32x3xf32, #tpu.memory_space<vmem>>, %arg11: memref<32x3xf32, #tpu.memory_space<vmem>>, %arg12: memref<1x32x32xf32, #tpu.memory_space<vmem>>, %arg13: memref<1x1x32xf32, #tpu.memory_space<vmem>>, %arg14: memref<32x32xf32, #tpu.memory_space<vmem>>, %arg15: memref<1x32xf32, #tpu.memory_space<vmem>>, %arg16: memref<1x8x1xf32, #tpu.memory_space<vmem>>, %arg17: memref<1x8x1xf32, #tpu.memory_space<vmem>>, %arg18: memref<8x32xf32, #tpu.memory_space<vmem>>, %arg19: memref<8x40xf32, #tpu.memory_space<vmem>>, %arg20: memref<8x1xf32, #tpu.memory_space<vmem>>, %arg21: memref<8x1xf32, #tpu.memory_space<vmem>>, %arg22: memref<8x1xf32, #tpu.memory_space<vmem>>) attributes {dimension_semantics = [#tpu.dimension_semantics<parallel>, #tpu.dimension_semantics<parallel>, #tpu.dimension_semantics<arbitrary>], iteration_bounds = array<i64: 2, 1, 1>, scalar_prefetch = 0 : i64, scratch_operands = 5 : i64, tpu.core_type = #tpu.core_type<tc>, window_params = [{transform_indices = @transform_0, window_bounds = array<i64: 1, 8, 32>}, {transform_indices = @transform_1, window_bounds = array<i64: 8, 32>}, {transform_indices = @transform_2, window_bounds = array<i64: 8, 3>}, {transform_indices = @transform_3, window_bounds = array<i64: 8, 3>}, {transform_indices = @transform_4, window_bounds = array<i64: 32, 128>}, {transform_indices = @transform_5, window_bounds = array<i64: 40, 128>}, {transform_indices = @transform_6, window_bounds = array<i64: 1, 128>}, {pipeline_mode = #tpu.pipeline_mode<synchronous>, transform_indices = @transform_7, window_bounds = array<i64: 32, 3>}, {pipeline_mode = #tpu.pipeline_mode<synchronous>, transform_indices = @transform_8, window_bounds = array<i64: 32, 3>}, {transform_indices = @transform_9, window_bounds = array<i64: 1, 32, 32>}, {transform_indices = @transform_10, window_bounds = array<i64: 1, 1, 32>}, {pipeline_mode = #tpu.pipeline_mode<synchronous>, transform_indices = @transform_11, window_bounds = array<i64: 32, 32>}, {pipeline_mode = #tpu.pipeline_mode<synchronous>, transform_indices = @transform_12, window_bounds = array<i64: 1, 32>}, {transform_indices = @transform_13, window_bounds = array<i64: 1, 8, 1>}, {transform_indices = @transform_14, window_bounds = array<i64: 1, 8, 1>}]} {
    %c0_i32 = arith.constant 0 : i32
    %0 = arith.cmpi eq, %arg2, %c0_i32 : i32
    %1 = arith.extui %0 : i1 to i32
    %c0_i32_0 = arith.constant 0 : i32
    %2 = arith.cmpi ne, %1, %c0_i32_0 : i32
    scf.if %2 {
      %c0_23 = arith.constant 0 : index
      %c0_24 = arith.constant 0 : index
      %c0_25 = arith.constant 0 : index
      %33 = vector.load %arg3[%c0_23, %c0_24, %c0_25] : memref<1x8x32xf32, #tpu.memory_space<vmem>>, vector<1x8x32xf32>
      %34 = vector.shape_cast %33 : vector<1x8x32xf32> to vector<8x32xf32>
      %c0_26 = arith.constant 0 : index
      %c0_27 = arith.constant 0 : index
      %35 = vector.load %arg4[%c0_26, %c0_27] : memref<8x32xf32, #tpu.memory_space<vmem>>, vector<8x32xf32>
      %c0_28 = arith.constant 0 : index
      %c0_29 = arith.constant 0 : index
      %36 = vector.load %arg5[%c0_28, %c0_29] : memref<8x3xf32, #tpu.memory_space<vmem>>, vector<8x3xf32>
      %c0_30 = arith.constant 0 : index
      %c0_31 = arith.constant 0 : index
      %c0_32 = arith.constant 0 : index
      %37 = vector.load %arg12[%c0_30, %c0_31, %c0_32] : memref<1x32x32xf32, #tpu.memory_space<vmem>>, vector<1x32x32xf32>
      %38 = vector.shape_cast %37 : vector<1x32x32xf32> to vector<32x32xf32>
      %cst_33 = arith.constant dense<0.000000e+00> : vector<8x32xf32>
      %39 = tpu.matmul %34, %38, %cst_33 {dimension_numbers = #tpu.dot_dimension_numbers<[1], [0], [0], [1], [0, 0, 1, 1], [], []>} : vector<8x32xf32>, vector<32x32xf32>, vector<8x32xf32> -> vector<8x32xf32>
      %c0_34 = arith.constant 0 : index
      %c0_35 = arith.constant 0 : index
      %c0_36 = arith.constant 0 : index
      %40 = vector.load %arg13[%c0_34, %c0_35, %c0_36] : memref<1x1x32xf32, #tpu.memory_space<vmem>>, vector<1x1x32xf32>
      %41 = vector.shape_cast %40 : vector<1x1x32xf32> to vector<1x32xf32>
      %42 = vector.broadcast %41 : vector<1x32xf32> to vector<8x32xf32>
      %43 = arith.addf %39, %42 : vector<8x32xf32>
      %44 = arith.mulf %34, %43 : vector<8x32xf32>
      %c0_37 = arith.constant 0 : index
      %c0_38 = arith.constant 0 : index
      %45 = vector.load %arg14[%c0_37, %c0_38] : memref<32x32xf32, #tpu.memory_space<vmem>>, vector<32x32xf32>
      %cst_39 = arith.constant dense<0.000000e+00> : vector<8x32xf32>
      %46 = tpu.matmul %44, %45, %cst_39 {dimension_numbers = #tpu.dot_dimension_numbers<[1], [0], [0], [1], [0, 0, 1, 1], [], []>} : vector<8x32xf32>, vector<32x32xf32>, vector<8x32xf32> -> vector<8x32xf32>
      %c0_40 = arith.constant 0 : index
      %c0_41 = arith.constant 0 : index
      %47 = vector.load %arg15[%c0_40, %c0_41] : memref<1x32xf32, #tpu.memory_space<vmem>>, vector<1x32xf32>
      %48 = vector.broadcast %47 : vector<1x32xf32> to vector<8x32xf32>
      %49 = arith.addf %46, %48 : vector<8x32xf32>
      %50 = arith.mulf %44, %44 : vector<8x32xf32>
      %cst_42 = arith.constant dense<0.000000e+00> : vector<8xf32>
      %51 = vector.multi_reduction <add>, %50, %cst_42 [1] : vector<8x32xf32> to vector<8xf32>
      %52 = vector.shape_cast %51 : vector<8xf32> to vector<8x1xf32>
      %cst_43 = arith.constant 9.99999993E-9 : f32
      %53 = vector.broadcast %cst_43 : f32 to vector<8x1xf32>
      %54 = arith.maximumf %52, %53 : vector<8x1xf32>
      %55 = math.rsqrt %54 : vector<8x1xf32>
      %56 = vector.broadcast %55 : vector<8x1xf32> to vector<8x32xf32>
      %57 = arith.mulf %44, %56 : vector<8x32xf32>
      %c0_44 = arith.constant 0 : index
      %c0_45 = arith.constant 0 : index
      %58 = vector.load %arg18[%c0_44, %c0_45] : memref<8x32xf32, #tpu.memory_space<vmem>>, vector<8x32xf32>
      tpu.vector_store %arg18[%c0_44, %c0_45], %49 {strides = array<i32>} : memref<8x32xf32, #tpu.memory_space<vmem>>, vector<8x32xf32>,
      %cst_46 = arith.constant 0.000000e+00 : f32
      %59 = vector.broadcast %cst_46 : f32 to vector<8x5xf32>
      %60 = tpu.concatenate %36, %57, %59 in 1 : vector<8x3xf32>, vector<8x32xf32>, vector<8x5xf32> -> vector<8x40xf32>
      %c0_47 = arith.constant 0 : index
      %c0_48 = arith.constant 0 : index
      %61 = vector.load %arg19[%c0_47, %c0_48] : memref<8x40xf32, #tpu.memory_space<vmem>>, vector<8x40xf32>
      tpu.vector_store %arg19[%c0_47, %c0_48], %60 {strides = array<i32>} : memref<8x40xf32, #tpu.memory_space<vmem>>, vector<8x40xf32>,
      %62 = arith.mulf %35, %35 : vector<8x32xf32>
      %cst_49 = arith.constant dense<0.000000e+00> : vector<8xf32>
      %63 = vector.multi_reduction <add>, %62, %cst_49 [1] : vector<8x32xf32> to vector<8xf32>
      %64 = vector.shape_cast %63 : vector<8xf32> to vector<8x1xf32>
      %cst_50 = arith.constant 9.99999993E-9 : f32
      %65 = vector.broadcast %cst_50 : f32 to vector<8x1xf32>
      %66 = arith.maximumf %64, %65 : vector<8x1xf32>
      %67 = math.rsqrt %66 : vector<8x1xf32>
      %68 = vector.broadcast %67 : vector<8x1xf32> to vector<8x32xf32>
      %69 = arith.mulf %35, %68 : vector<8x32xf32>
      %70 = arith.mulf %49, %35 : vector<8x32xf32>
      %cst_51 = arith.constant dense<0.000000e+00> : vector<8xf32>
      %71 = vector.multi_reduction <add>, %70, %cst_51 [1] : vector<8x32xf32> to vector<8xf32>
      %72 = vector.shape_cast %71 : vector<8xf32> to vector<8x1xf32>
      %73 = arith.mulf %36, %36 : vector<8x3xf32>
      %cst_52 = arith.constant dense<0.000000e+00> : vector<8xf32>
      %74 = vector.multi_reduction <add>, %73, %cst_52 [1] : vector<8x3xf32> to vector<8xf32>
      %75 = vector.shape_cast %74 : vector<8xf32> to vector<8x1xf32>
      %76 = arith.mulf %57, %69 : vector<8x32xf32>
      %cst_53 = arith.constant dense<0.000000e+00> : vector<8xf32>
      %77 = vector.multi_reduction <add>, %76, %cst_53 [1] : vector<8x32xf32> to vector<8xf32>
      %78 = vector.shape_cast %77 : vector<8xf32> to vector<8x1xf32>
      %79 = arith.subf %75, %78 : vector<8x1xf32>
      %80 = arith.mulf %72, %79 : vector<8x1xf32>
      %81 = arith.mulf %80, %79 : vector<8x1xf32>
      %c0_54 = arith.constant 0 : index
      %c0_55 = arith.constant 0 : index
      %82 = vector.load %arg22[%c0_54, %c0_55] : memref<8x1xf32, #tpu.memory_space<vmem>>, vector<8x1xf32>
      tpu.vector_store %arg22[%c0_54, %c0_55], %81 {strides = array<i32>} : memref<8x1xf32, #tpu.memory_space<vmem>>, vector<8x1xf32>,
      %cst_56 = arith.constant -1.000000e+30 : f32
      %83 = vector.broadcast %cst_56 : f32 to vector<8x1xf32>
      %c0_57 = arith.constant 0 : index
      %c0_58 = arith.constant 0 : index
      %84 = vector.load %arg20[%c0_57, %c0_58] : memref<8x1xf32, #tpu.memory_space<vmem>>, vector<8x1xf32>
      tpu.vector_store %arg20[%c0_57, %c0_58], %83 {strides = array<i32>} : memref<8x1xf32, #tpu.memory_space<vmem>>, vector<8x1xf32>,
      %cst_59 = arith.constant 0.000000e+00 : f32
      %85 = vector.broadcast %cst_59 : f32 to vector<8x1xf32>
      %c0_60 = arith.constant 0 : index
      %c0_61 = arith.constant 0 : index
      %86 = vector.load %arg21[%c0_60, %c0_61] : memref<8x1xf32, #tpu.memory_space<vmem>>, vector<8x1xf32>
      tpu.vector_store %arg21[%c0_60, %c0_61], %85 {strides = array<i32>} : memref<8x1xf32, #tpu.memory_space<vmem>>, vector<8x1xf32>,
      %c0_62 = arith.constant 0 : index
      %c0_63 = arith.constant 0 : index
      %87 = vector.load %arg10[%c0_62, %c0_63] : memref<32x3xf32, #tpu.memory_space<vmem>>, vector<32x3xf32>
      %cst_64 = arith.constant dense<0.000000e+00> : vector<8x3xf32>
      %88 = tpu.matmul %49, %87, %cst_64 {dimension_numbers = #tpu.dot_dimension_numbers<[1], [0], [0], [1], [0, 0, 1, 1], [], []>} : vector<8x32xf32>, vector<32x3xf32>, vector<8x3xf32> -> vector<8x3xf32>
      %c0_65 = arith.constant 0 : index
      %c0_66 = arith.constant 0 : index
      %89 = vector.load %arg11[%c0_65, %c0_66] : memref<32x3xf32, #tpu.memory_space<vmem>>, vector<32x3xf32>
      %cst_67 = arith.constant dense<0.000000e+00> : vector<8x3xf32>
      %90 = tpu.matmul %57, %89, %cst_67 {dimension_numbers = #tpu.dot_dimension_numbers<[1], [0], [0], [1], [0, 0, 1, 1], [], []>} : vector<8x32xf32>, vector<32x3xf32>, vector<8x3xf32> -> vector<8x3xf32>
      %91 = arith.subf %36, %90 : vector<8x3xf32>
      %92 = arith.mulf %88, %91 : vector<8x3xf32>
      %93 = arith.mulf %92, %91 : vector<8x3xf32>
      %cst_68 = arith.constant dense<0xFF800000> : vector<8xf32>
      %94 = vector.multi_reduction <maximumf>, %93, %cst_68 [1] : vector<8x3xf32> to vector<8xf32>
      %95 = vector.shape_cast %94 : vector<8xf32> to vector<8x1xf32>
      %96 = vector.broadcast %95 : vector<8x1xf32> to vector<8x3xf32>
      %97 = arith.subf %93, %96 : vector<8x3xf32>
      %98 = math.exp %97 : vector<8x3xf32>
      %cst_69 = arith.constant dense<0.000000e+00> : vector<8xf32>
      %99 = vector.multi_reduction <add>, %98, %cst_69 [1] : vector<8x3xf32> to vector<8xf32>
      %100 = vector.shape_cast %99 : vector<8xf32> to vector<8x1xf32>
      %101 = math.log %100 : vector<8x1xf32>
      %102 = arith.addf %95, %101 : vector<8x1xf32>
      %c0_70 = arith.constant 0 : index
      %c0_71 = arith.constant 0 : index
      %103 = vector.load %arg6[%c0_70, %c0_71] : memref<8x3xf32, #tpu.memory_space<vmem>>, vector<8x3xf32>
      %104 = arith.mulf %93, %103 : vector<8x3xf32>
      %cst_72 = arith.constant dense<0.000000e+00> : vector<8xf32>
      %105 = vector.multi_reduction <add>, %104, %cst_72 [1] : vector<8x3xf32> to vector<8xf32>
      %106 = vector.shape_cast %105 : vector<8xf32> to vector<8x1xf32>
      %107 = arith.subf %102, %106 : vector<8x1xf32>
      %c0_73 = arith.constant 0 : index
      %c0_74 = arith.constant 0 : index
      %c0_75 = arith.constant 0 : index
      %108 = vector.load %arg17[%c0_73, %c0_74, %c0_75] : memref<1x8x1xf32, #tpu.memory_space<vmem>>, vector<1x8x1xf32>
      %109 = vector.shape_cast %108 : vector<1x8x1xf32> to vector<8x1xf32>
      %110 = vector.shape_cast %107 : vector<8x1xf32> to vector<1x8x1xf32>
      tpu.vector_store %arg17[%c0_73, %c0_74, %c0_75], %110 {strides = array<i32>} : memref<1x8x1xf32, #tpu.memory_space<vmem>>, vector<1x8x1xf32>,
    } else {
    }
    %c0 = arith.constant 0 : index
    %c0_1 = arith.constant 0 : index
    %3 = vector.load %arg18[%c0, %c0_1] : memref<8x32xf32, #tpu.memory_space<vmem>>, vector<8x32xf32>
    %c0_2 = arith.constant 0 : index
    %c0_3 = arith.constant 0 : index
    %4 = vector.load %arg7[%c0_2, %c0_3] : memref<32x128xf32, #tpu.memory_space<vmem>>, vector<32x128xf32>
    %cst = arith.constant dense<0.000000e+00> : vector<8x128xf32>
    %5 = tpu.matmul %3, %4, %cst {dimension_numbers = #tpu.dot_dimension_numbers<[1], [0], [0], [1], [0, 0, 1, 1], [], []>} : vector<8x32xf32>, vector<32x128xf32>, vector<8x128xf32> -> vector<8x128xf32>
    %c0_4 = arith.constant 0 : index
    %c0_5 = arith.constant 0 : index
    %6 = vector.load %arg19[%c0_4, %c0_5] : memref<8x40xf32, #tpu.memory_space<vmem>>, vector<8x40xf32>
    %c0_6 = arith.constant 0 : index
    %c0_7 = arith.constant 0 : index
    %7 = vector.load %arg8[%c0_6, %c0_7] : memref<40x128xf32, #tpu.memory_space<vmem>>, vector<40x128xf32>
    %cst_8 = arith.constant dense<0.000000e+00> : vector<8x128xf32>
    %8 = tpu.matmul %6, %7, %cst_8 {dimension_numbers = #tpu.dot_dimension_numbers<[1], [0], [0], [1], [0, 0, 1, 1], [], []>} : vector<8x40xf32>, vector<40x128xf32>, vector<8x128xf32> -> vector<8x128xf32>
    %9 = arith.mulf %5, %8 : vector<8x128xf32>
    %10 = arith.mulf %9, %8 : vector<8x128xf32>
    %c0_9 = arith.constant 0 : index
    %c0_10 = arith.constant 0 : index
    %11 = vector.load %arg9[%c0_9, %c0_10] : memref<1x128xf32, #tpu.memory_space<vmem>>, vector<1x128xf32>
    %12 = vector.broadcast %11 : vector<1x128xf32> to vector<8x128xf32>
    %13 = arith.addf %10, %12 : vector<8x128xf32>
    %c0_11 = arith.constant 0 : index
    %c0_12 = arith.constant 0 : index
    %14 = vector.load %arg20[%c0_11, %c0_12] : memref<8x1xf32, #tpu.memory_space<vmem>>, vector<8x1xf32>
    %cst_13 = arith.constant dense<0xFF800000> : vector<8xf32>
    %15 = vector.multi_reduction <maximumf>, %13, %cst_13 [1] : vector<8x128xf32> to vector<8xf32>
    %16 = vector.shape_cast %15 : vector<8xf32> to vector<8x1xf32>
    %17 = arith.maximumf %14, %16 : vector<8x1xf32>
    %18 = arith.subf %14, %17 : vector<8x1xf32>
    %19 = math.exp %18 : vector<8x1xf32>
    %c0_14 = arith.constant 0 : index
    %c0_15 = arith.constant 0 : index
    %20 = vector.load %arg21[%c0_14, %c0_15] : memref<8x1xf32, #tpu.memory_space<vmem>>, vector<8x1xf32>
    %21 = arith.mulf %19, %20 : vector<8x1xf32>
    %22 = vector.broadcast %17 : vector<8x1xf32> to vector<8x128xf32>
    %23 = arith.subf %13, %22 : vector<8x128xf32>
    %24 = math.exp %23 : vector<8x128xf32>
    %cst_16 = arith.constant dense<0.000000e+00> : vector<8xf32>
    %25 = vector.multi_reduction <add>, %24, %cst_16 [1] : vector<8x128xf32> to vector<8xf32>
    %26 = vector.shape_cast %25 : vector<8xf32> to vector<8x1xf32>
    %27 = arith.addf %21, %26 : vector<8x1xf32>
    %c0_17 = arith.constant 0 : index
    %c0_18 = arith.constant 0 : index
    %28 = vector.load %arg21[%c0_17, %c0_18] : memref<8x1xf32, #tpu.memory_space<vmem>>, vector<8x1xf32>
    tpu.vector_store %arg21[%c0_17, %c0_18], %27 {strides = array<i32>} : memref<8x1xf32, #tpu.memory_space<vmem>>, vector<8x1xf32>,
    %c0_19 = arith.constant 0 : index
    %c0_20 = arith.constant 0 : index
    %29 = vector.load %arg20[%c0_19, %c0_20] : memref<8x1xf32, #tpu.memory_space<vmem>>, vector<8x1xf32>
    tpu.vector_store %arg20[%c0_19, %c0_20], %17 {strides = array<i32>} : memref<8x1xf32, #tpu.memory_space<vmem>>, vector<8x1xf32>,
    %c0_i32_21 = arith.constant 0 : i32
    %30 = arith.cmpi eq, %arg2, %c0_i32_21 : i32
    %31 = arith.extui %30 : i1 to i32
    %c0_i32_22 = arith.constant 0 : i32
    %32 = arith.cmpi ne, %31, %c0_i32_22 : i32
    scf.if %32 {
      %c0_23 = arith.constant 0 : index
      %c0_24 = arith.constant 0 : index
      %33 = vector.load %arg20[%c0_23, %c0_24] : memref<8x1xf32, #tpu.memory_space<vmem>>, vector<8x1xf32>
      %c0_25 = arith.constant 0 : index
      %c0_26 = arith.constant 0 : index
      %34 = vector.load %arg21[%c0_25, %c0_26] : memref<8x1xf32, #tpu.memory_space<vmem>>, vector<8x1xf32>
      %35 = math.log %34 : vector<8x1xf32>
      %36 = arith.addf %33, %35 : vector<8x1xf32>
      %c0_27 = arith.constant 0 : index
      %c0_28 = arith.constant 0 : index
      %37 = vector.load %arg22[%c0_27, %c0_28] : memref<8x1xf32, #tpu.memory_space<vmem>>, vector<8x1xf32>
      %38 = arith.subf %36, %37 : vector<8x1xf32>
      %c0_29 = arith.constant 0 : index
      %c0_30 = arith.constant 0 : index
      %c0_31 = arith.constant 0 : index
      %39 = vector.load %arg16[%c0_29, %c0_30, %c0_31] : memref<1x8x1xf32, #tpu.memory_space<vmem>>, vector<1x8x1xf32>
      %40 = vector.shape_cast %39 : vector<1x8x1xf32> to vector<8x1xf32>
      %41 = vector.shape_cast %38 : vector<8x1xf32> to vector<1x8x1xf32>
      tpu.vector_store %arg16[%c0_29, %c0_30, %c0_31], %41 {strides = array<i32>} : memref<1x8x1xf32, #tpu.memory_space<vmem>>, vector<1x8x1xf32>,
    } else {
    }
    return
  }
  func.func @transform_0(%arg0: i32, %arg1: i32, %arg2: i32) -> (i32, i32, i32) {
    %c0_i32 = arith.constant 0 : i32
    %c0_i32_0 = arith.constant 0 : i32
    return %arg0, %arg1, %c0_i32 : i32, i32, i32
  }
  func.func @transform_1(%arg0: i32, %arg1: i32, %arg2: i32) -> (i32, i32) {
    %c0_i32 = arith.constant 0 : i32
    %c0_i32_0 = arith.constant 0 : i32
    return %arg1, %c0_i32 : i32, i32
  }
  func.func @transform_2(%arg0: i32, %arg1: i32, %arg2: i32) -> (i32, i32) {
    %c0_i32 = arith.constant 0 : i32
    %c0_i32_0 = arith.constant 0 : i32
    return %arg1, %c0_i32 : i32, i32
  }
  func.func @transform_3(%arg0: i32, %arg1: i32, %arg2: i32) -> (i32, i32) {
    %c0_i32 = arith.constant 0 : i32
    %c0_i32_0 = arith.constant 0 : i32
    return %arg1, %c0_i32 : i32, i32
  }
  func.func @transform_4(%arg0: i32, %arg1: i32, %arg2: i32) -> (i32, i32) {
    %c0_i32 = arith.constant 0 : i32
    %c0_i32_0 = arith.constant 0 : i32
    return %c0_i32, %arg2 : i32, i32
  }
  func.func @transform_5(%arg0: i32, %arg1: i32, %arg2: i32) -> (i32, i32) {
    %c0_i32 = arith.constant 0 : i32
    %c0_i32_0 = arith.constant 0 : i32
    return %c0_i32, %arg2 : i32, i32
  }
  func.func @transform_6(%arg0: i32, %arg1: i32, %arg2: i32) -> (i32, i32) {
    %c0_i32 = arith.constant 0 : i32
    %c0_i32_0 = arith.constant 0 : i32
    return %c0_i32, %arg2 : i32, i32
  }
  func.func @transform_7(%arg0: i32, %arg1: i32, %arg2: i32) -> (i32, i32) {
    %c0_i32 = arith.constant 0 : i32
    %c0_i32_0 = arith.constant 0 : i32
    %c0_i32_1 = arith.constant 0 : i32
    return %c0_i32, %c0_i32_0 : i32, i32
  }
  func.func @transform_8(%arg0: i32, %arg1: i32, %arg2: i32) -> (i32, i32) {
    %c0_i32 = arith.constant 0 : i32
    %c0_i32_0 = arith.constant 0 : i32
    %c0_i32_1 = arith.constant 0 : i32
    return %c0_i32, %c0_i32_0 : i32, i32
  }
  func.func @transform_9(%arg0: i32, %arg1: i32, %arg2: i32) -> (i32, i32, i32) {
    %c0_i32 = arith.constant 0 : i32
    %c0_i32_0 = arith.constant 0 : i32
    %c0_i32_1 = arith.constant 0 : i32
    return %arg0, %c0_i32, %c0_i32_0 : i32, i32, i32
  }
  func.func @transform_10(%arg0: i32, %arg1: i32, %arg2: i32) -> (i32, i32, i32) {
    %c0_i32 = arith.constant 0 : i32
    %c0_i32_0 = arith.constant 0 : i32
    %c0_i32_1 = arith.constant 0 : i32
    return %arg0, %c0_i32, %c0_i32_0 : i32, i32, i32
  }
  func.func @transform_11(%arg0: i32, %arg1: i32, %arg2: i32) -> (i32, i32) {
    %c0_i32 = arith.constant 0 : i32
    %c0_i32_0 = arith.constant 0 : i32
    %c0_i32_1 = arith.constant 0 : i32
    return %c0_i32, %c0_i32_0 : i32, i32
  }
  func.func @transform_12(%arg0: i32, %arg1: i32, %arg2: i32) -> (i32, i32) {
    %c0_i32 = arith.constant 0 : i32
    %c0_i32_0 = arith.constant 0 : i32
    %c0_i32_1 = arith.constant 0 : i32
    return %c0_i32, %c0_i32_0 : i32, i32
  }
  func.func @transform_13(%arg0: i32, %arg1: i32, %arg2: i32) -> (i32, i32, i32) {
    %c0_i32 = arith.constant 0 : i32
    %c0_i32_0 = arith.constant 0 : i32
    return %arg0, %arg1, %c0_i32 : i32, i32, i32
  }
  func.func @transform_14(%arg0: i32, %arg1: i32, %arg2: i32) -> (i32, i32, i32) {
    %c0_i32 = arith.constant 0 : i32
    %c0_i32_0 = arith.constant 0 : i32
    return %arg0, %arg1, %c0_i32 : i32, i32, i32
  }
}

</mosaic_0001>

<bundles_post_ra>
// kernel: tpu_custom_call.1
= control target key start
LH: loop header
LB: loop body
LE: loop exit
PB: predicated region body
PF: predicated region fallthrough
CT: control target
= control target key end

     0   :  { %s2313_s0 = inlined_call_operand.hbm [shape: f32[2,8,32], index: 0, kind: input, shape index: {}]   ;;  %s2314_s1 = inlined_call_operand.vmem [shape: f32[8,32], index: 1, kind: input, shape index: {}]   ;;  %s2315_s2 = inlined_call_operand.vmem [shape: f32[8,3], index: 2, kind: input, shape index: {}]   ;;  %s2316_s3 = inlined_call_operand.vmem [shape: f32[8,3], index: 3, kind: input, shape index: {}]   ;;  %s2317_s4 = inlined_call_operand.hbm [shape: f32[32,128], index: 4, kind: input, shape index: {}]   ;;  %s2318_s5 = inlined_call_operand.vmem [shape: f32[40,128], index: 5, kind: input, shape index: {}]   ;;  %s2319_s6 = inlined_call_operand.hbm [shape: f32[1,128], index: 6, kind: input, shape index: {}]   ;;  %s2320_s7 = inlined_call_operand.vmem [shape: f32[32,3], index: 7, kind: input, shape index: {}]   ;;  %s2321_s8 = inlined_call_operand.vmem [shape: f32[32,3], index: 8, kind: input, shape index: {}]   ;;  %s2322_s9 = inlined_call_operand.vmem [shape: f32[2,32,32], index: 9, kind: input, shape index: {}]   ;;  %s2323_s10 = inlined_call_operand.vmem [shape: f32[2,1,32], index: 10, kind: input, shape index: {}]   ;;  %s2324_s11 = inlined_call_operand.hbm [shape: f32[32,32], index: 11, kind: input, shape index: {}]   ;;  %s2325_s12 = inlined_call_operand.vmem [shape: f32[1,32], index: 12, kind: input, shape index: {}]   ;;  %s2326_s13 = inlined_call_operand.vmem [shape: f32[2,8,1], index: 13, kind: output, shape index: {0}]   ;;  %s2327_s14 = inlined_call_operand.vmem [shape: f32[2,8,1], index: 14, kind: output, shape index: {1}]  }
   0x1   :  { %2331 = sst [smem:[#allocation17_spill]] %s2315_s2 }
   0x2   :  { %2332 = sst [smem:[#allocation18_spill]] %s2316_s3 }
   0x3   :  { %2333 = sst [smem:[#allocation19_spill]] %s2317_s4 }
   0x4   :  { %2334 = sst [smem:[#allocation20_spill]] %s2319_s6 }
   0x5   :  { %2335 = sst [smem:[#allocation21_spill]] %s2324_s11 }
   0x6   :  { %2336 = sst [smem:[#allocation22_spill]] %s2326_s13 }
   0x7   :  { %2337 = sst [smem:[#allocation23_spill]] %s2327_s14 }
   0x8   :  { %20 = vsyncpa [#allocation8], 0 }
   0x9   :  { %22 = vsyncpa [#allocation8 + $0x1], 0 }
   0xa   :  { %23 = vsyncpa [#allocation10], 0 }
   0xb   :  { %24 = vsyncpa [#allocation13], 0  ;;  %s2025_s29 = smov 0   ;;  %s2027_s30 = smov 0  }
   0xc   :  { %s2029_s15 = smov 0   ;;  %s2031_s16 = smov 0  }
   0xd   :  { %s2033_s17 = smov 0   ;;  %s2035_s18 = smov 0  }
   0xe LB: > { %s1531_s19 = sadd.s32 4294967295, %s1937_s18   ;;  %p71_p0 = scmp.ne.s32.totalorder %s1921_s30, %s1917_s29  ;;  %s1937_s18 = sphi %s2035_s18, %s30_s18   ;;  %s1933_s17 = sphi %s2033_s17, %s2356_s17   ;;  %s1929_s16 = sphi %s2031_s16, %s2355_s16   ;;  %s1925_s15 = sphi %s2029_s15, %s2354_s15   ;;  %s1921_s30 = sphi %s2027_s30, %s2353_s30   ;;  %s1917_s29 = sphi %s2025_s29, %s2352_s29  }
   0xf   : > { %p2055_p1 = scmp.eq.s32.totalorder %s1531_s19, 0  ;;  %p1533_p2 = scmp.ge.s32.totalorder %s1937_s18, 1 }
  0x10   : > { %p430_p3 = scmp.lt.s32.totalorder %s1937_s18, 3  ;;  %s1939_s23 = smov [#allocation9]  }
  0x11   : > { %s2338_s20 = scalar_select %p2055_p1, 1, 0 }
  0x12   : > { %p2063_p4 = por %p2055_p1, %p71_p0  ;;  %p2067_p5 = pnand %p1533_p2, %p430_p3 }
  0x13   : > { %s465_s24 = sshll.u32 %s1939_s23, 4  ;;  %s1940_s26 = smov [#allocation11]   ;;  %s466_s24 = int_to_ptr.vmem [resolvable:$true] %s465_s24 }
  0x14   : > { %s2339_s21 = scalar_select %p2063_p4, 1, 0 }
  0x15   : > { %p1678_p6 = pneg %p2067_p5  ;;  %s488_s27 = sshll.u32 %s1940_s26, 4  ;;  %s489_s27 = int_to_ptr.vmem [resolvable:$true] %s488_s27 }
  0x16   : > { %s1941_s28 = smov [#allocation12]   ;;  %s1784_s19 = scalar_lea.vmem %s466_s24, 512 }
  0x17   : > { %p2075_p7 = pnand %p1678_p6, %p2055_p1  ;;  %s504_s29 = sshll.u32 %s1941_s28, 4  ;;  %s505_s29 = int_to_ptr.vmem [resolvable:$true] %s504_s29 }
  0x18   : > { %p1785_p9 = scmp.ne.s32.totalorder %s466_s24, %s1784_s19  ;;  %p1792_p12 = scmp.lt.s32.totalorder %s466_s24, %s466_s24 }
  0x19   : > { %p1775_p8 = pneg %p2075_p7  ;;  %p1793_p13 = scmp.lt.s32.totalorder %s1784_s19, %s1784_s19 }
  0x1b   : > { %p1787_p10 = pnand %p1785_p9, %p1775_p8  ;;  %p1794_p0 = por %p1793_p13, %p1792_p12 }
  0x1d   : > { %p1788_p11 = pneg %p1787_p10 }
  0x1f   : > { %p1795_p2 = pnand %p1794_p0, %p1788_p11 }
  0x21   : > { %1798 = shalt.err (!%p1795_p2)
}
  0x22   : > { %s1942_s23 = smov 128   ;;  %s1943_s26 = smov 8  }
  0x23   : > { %s2342_s4 = sld [smem:[#allocation19_spill]]  ;;  %s1810_s13 = scalar_lea.vmem %s489_s27, 16 }
  0x24   : > { %p1811_p3 = scmp.ne.s32.totalorder %s489_s27, %s1810_s13  ;;  %s1817_s3 = scalar_lea.vmem %s489_s27, 32 }
  0x25   : > { %p1818_p10 = scmp.lt.s32.totalorder %s489_s27, %s489_s27  ;;  %p1819_p12 = scmp.lt.s32.totalorder %s1817_s3, %s1810_s13 }
  0x26   : > { %p1813_p6 = pnand %p1811_p3, %p1775_p8 }
  0x27   : > { %p1820_p11 = por %p1819_p12, %p1818_p10 }
  0x28   : > { %p1814_p9 = pneg %p1813_p6 }
  0x29   : > { %1681 = dma.hbm_to_vmem [thread:$0]  (!%p2075_p7), %s2342_s4, 512, %s466_s24, [#allocation10], %s1942_s23, %s1942_s23, %s1943_s26  }
  0x2a   : > { %p1821_p13 = pnand %p1820_p11, %p1814_p9 }
  0x2c   : > { %1824 = shalt.err (!%p1821_p13)
}
  0x2d   : > { %s2343_s6 = sld [smem:[#allocation20_spill]]  ;;  %s1836_s14 = scalar_lea.vmem %s505_s29, 512 }
  0x2e   : > { %p1837_p0 = scmp.ne.s32.totalorder %s505_s29, %s1836_s14  ;;  %p1844_p6 = scmp.lt.s32.totalorder %s505_s29, %s505_s29 }
  0x2f   : > { %p1845_p1 = scmp.lt.s32.totalorder %s1836_s14, %s1836_s14 }
  0x30   : > { %p1839_p2 = pnand %p1837_p0, %p1775_p8 }
  0x31   : > { %p1846_p4 = por %p1845_p1, %p1844_p6 }
  0x32   : > { %p1840_p3 = pneg %p1839_p2 }
  0x33   : > { %1684 = dma.hbm_to_vmem [thread:$0]  (!%p2075_p7), %s2343_s6, 16, %s489_s27, [#allocation10]  }
  0x34   : > { %p1847_p10 = pnand %p1846_p4, %p1840_p3 }
  0x36   : > { %1850 = shalt.err (!%p1847_p10)
}
  0x37   : > { %s2344_s11 = sld [smem:[#allocation21_spill]]  ;;  %s49_s2 = sadd.s32 1, %s1933_s17 }
  0x38   : > { %p65_p1 = scmp.ne.s32.totalorder %s1925_s15, %s1921_s30  ;;  %p51_p4 = scmp.ge.s32.totalorder %s49_s2, 2 }
  0x39   : > { %p66_p8 = scmp.eq.s32.totalorder %s1937_s18, 0  ;;  %s58_s24 = sadd.s32 1, %s1925_s15 }
  0x3a   : > { %s521_s25 = sand.u32 1, %s1925_s15   ;;  %s2358_s2 = smov (%p51_p4, %s49_s2), 0 }
  0x3b   : > { %p67_p9 = por %p66_p8, %p65_p1  ;;  %p1695_p12 = scmp.lt.s32.totalorder %s1937_s18, 2 }
  0x3c   : > { %s53_s27 = ssub.s32 %s1933_s17, %s2358_s2  ;;  %s1542_s28 = sshll.u32 %s521_s25, 3 }
  0x3d   : > { %1687 = dma.hbm_to_vmem [thread:$0]  (!%p2075_p7), %s2344_s11, 512, %s505_s29, [#allocation13], %s1942_s23, %s1942_s23, %s1943_s26  }
  0x3e   : > { %p56_p11 = scmp.eq.s32.totalorder %s53_s27, 0  ;;  %s1543_s19 = sshll.u32 %s1933_s17, 7 }
  0x3f   : > { %s525_s14 = scalar_lea.vmem [#allocation7], %s1542_s28  ;;  %s531_s26 = scalar_lea.hbm %s2313_s0, %s1543_s19 }
  0x40   : > { %s533_s3 = sshll.u32 %s525_s14, 4  ;;  %p2123_p7 = pnand %p1695_p12, %p67_p9  ;;  %s534_s3 = int_to_ptr.vmem [resolvable:$true] %s533_s3 }
  0x41   : > { %s2118_s13 = scalar_select %p56_p11, %s1925_s15, %s58_s24  }
  0x42   : > { %s522_s6 = scalar_lea.sflag [#allocation8], %s521_s25  ;;  %p1853_p13 = pneg %p2123_p7 }
  0x43   : > { %s1864_s11 = scalar_lea.vmem %s534_s3, 128  ;;  %s1944_s27 = smov [#allocation7]  }
  0x44   : > { %p1865_p0 = scmp.ne.s32.totalorder %s534_s3, %s1864_s11  ;;  %s1869_s24 = sshll.u32 %s1944_s27, 4  ;;  %s1870_s24 = int_to_ptr.vmem [resolvable:$false] %s1869_s24 }
  0x45   : > { %s1871_s28 = scalar_lea.vmem %s1870_s24, 256  ;;  %p1872_p6 = scmp.lt.s32.totalorder %s534_s3, %s1870_s24 }
  0x46   : > { %p1867_p2 = pnand %p1865_p0, %p1853_p13  ;;  %p1873_p10 = scmp.lt.s32.totalorder %s1871_s28, %s1864_s11 }
  0x48   : > { %p1868_p3 = pneg %p1867_p2  ;;  %p1874_p1 = por %p1873_p10, %p1872_p6 }
  0x4a   : > { %p1875_p4 = pnand %p1874_p1, %p1868_p3 }
  0x4c   : > { %1878 = shalt.err (!%p1875_p4)
}
  0x4d   : > { %1691 = dma.hbm_to_vmem [thread:$0]  (!%p2123_p7), %s531_s26, 128, %s534_s3, %s522_s6  }
  0x4e   : > { %556 = sbr.rel (%p2067_p5) target bundleno = 1274 (0x4fa), region = 72  ;;  %s558_s25 = sand.u32 (!%p2067_p5), 1, %s1921_s30  }
  0x4f   : > { %s2134_s19 = sshll.u32 (!%p2067_p5), %s558_s25, 3  ;;  %s559_s14 = scalar_lea.sflag (!%p2067_p5), [#allocation8], %s558_s25 }
  0x50   : > { %s562_s29 = scalar_lea.vmem (!%p2067_p5), [#allocation7], %s2134_s19  ;;  %p2346_p8 = scmp.ne.s32.totalorder (!%p2067_p5), %s2339_s21, 0 }
  0x53   : > { %1904 = dma.done.wait (%p2346_p8), %s559_s14, 128  }
  0x54   : > { %1906 = vsyncadd (%p2346_p8), %s559_s14, 4294967168  ;;  %p2347_p9 = scmp.ne.s32.totalorder %s2338_s20, 0 }
  0x56   : > { %1908 = dma.done.wait (%p2347_p9), [#allocation10], 528  }
  0x57   : > { %1910 = vsyncadd (%p2347_p9), [#allocation10], 4294966768 }
  0x58   : > { %1912 = dma.done.wait (%p2347_p9), [#allocation13], 512  }
  0x59   : > { %1914 = vsyncadd (%p2347_p9), [#allocation13], 4294966784  ;;  %p668_p5 = scmp.lt.s32.totalorder %s1929_s16, 1  ;;  %v1945_v0 = vmov 0.0   ;;  %vm1946_vm0 = vmmov 0   ;;  %v786_v3 = vld [vmem:[#allocation12 + $0x18] sm:$0xff] }
  0x5a   : > { %1596 = vmatprep.subr.mxu0 %v1945_v0  ;;  %1604 = vmatprep.mubr.msk.f32.mxu0 %vm1946_vm0, %v1945_v0  ;;  %v694_v6 = vld [vmem:[%s562_s29] sm:$0xff]  ;;  %vm708_vm1 = vcmask 261120   ;;  %v783_v9 = vld [vmem:[#allocation12] sm:$0xff]  ;;  %s1947_s27 = smov 3   ;;  %s2348_s26 = sld [smem:[#allocation17_spill]]  ;;  %vm879_vm2 = vcmask 23552  }
  0x5b   : > { %s2360_s16 = smov (!%p668_p5, %s1929_s16), 1  ;;  %1607 = vmatprep.subr.mxu1 %v1945_v0  ;;  %1615 = vmatprep.mubr.msk.f32.mxu1 %vm1946_vm0, %v1945_v0  ;;  %v785_v7 = vld [vmem:[#allocation12 + $0x10] sm:$0xff]  ;;  %v784_v8 = vld [vmem:[#allocation12 + $0x8] sm:$0xff]  ;;  %v991_v17 = vld [vmem:[%s2321_s8 + $0x18] sm:$0xff]  ;;  %vm881_vm3 = vcmask 285696   ;;  %vm883_vm4 = vcmask 326656  }
  0x5c   : > { %s1564_s4 = sshll.u32 %s2360_s16, 5  ;;  %1608 = vmatpush3.msra.mxu1 %v786_v3  ;;  %s675_s3 = scalar_lea.vmem %s2323_s10, %s2360_s16  ;;  %v990_v18 = vld [vmem:[%s2321_s8 + $0x10] sm:$0xff]  ;;  %v989_v19 = vld [vmem:[%s2321_s8 + $0x8] sm:$0xff]  ;;  %v988_v20 = vld [vmem:[%s2321_s8] sm:$0xff]  ;;  %vm907_vm5 = vcmask 7168  }
  0x5d   : > { %s672_s20 = scalar_lea.vmem %s2322_s9, %s1564_s4  ;;  %1609 = vmatprep.subr.mxu1 %v1945_v0  ;;  %v1553_v10 = vld [vmem:[%s675_s3] ss:$0 sm:$0xff]  ;;  %v914_v21 = vld [vmem:[%s2320_s7 + $0x18] sm:$0xff]  ;;  %v913_v22 = vld [vmem:[%s2320_s7 + $0x10] sm:$0xff]  ;;  %v1948_v53 = vmov -1e+30  }
  0x5e   : > { %v700_v1 = vld [vmem:[%s672_s20 + $0x18] sm:$0xff]  ;;  %v699_v2 = vld [vmem:[%s672_s20 + $0x10] sm:$0xff]  ;;  %v698_v4 = vld [vmem:[%s672_s20 + $0x8] sm:$0xff]  ;;  %1610 = vmatpush3.msra.mxu1 %v785_v7  ;;  %909 = vst.msk [vmem:[#allocation4] sm:$0xff] %vm907_vm5, %v1948_v53  ;;  %s2349_s28 = sld [smem:[#allocation18_spill]]  ;;  %s1551_s25 = sshll.u32 %s2360_s16, 3 }
  0x5f   : > { %1597 = vmatpush3.msra.mxu0 %v700_v1  ;;  %v697_v5 = vld [vmem:[%s672_s20] sm:$0xff]  ;;  %1611 = vmatprep.subr.mxu1 %v1945_v0  ;;  %v912_v23 = vld [vmem:[%s2320_s7 + $0x8] sm:$0xff]  ;;  %v1169_v30 = vld [vmem:[%s2318_s5 + $0x18] sm:$0xff]  ;;  %910 = vst.msk [vmem:[#allocation5] sm:$0xff] %vm907_vm5, %v1945_v0  ;;  %s2350_s29 = sld [smem:[#allocation22_spill]] }
  0x60   : > { %1598 = vmatprep.subr.mxu0 %v1945_v0  ;;  %1612 = vmatpush3.msra.mxu1 %v784_v8  ;;  %v911_v24 = vld [vmem:[%s2320_s7] sm:$0xff]  ;;  %v1168_v31 = vld [vmem:[%s2318_s5 + $0x10] sm:$0xff]  ;;  %v1167_v32 = vld [vmem:[%s2318_s5 + $0x8] sm:$0xff]  ;;  %s2351_s20 = sld [smem:[#allocation23_spill]] }
  0x61   : > { %1599 = vmatpush3.msra.mxu0 %v699_v2  ;;  %1613 = vmatprep.subr.mxu1 %v1945_v0  ;;  %v1170_v29 = vld [vmem:[%s2318_s5 + $0x20] sm:$0xff]  ;;  %v1090_v40 = vld [vmem:[#allocation9 + $0x18] sm:$0xff]  ;;  %v1089_v42 = vld [vmem:[#allocation9 + $0x10] sm:$0xff] }
  0x62   : > { %1600 = vmatprep.subr.mxu0 %v1945_v0  ;;  %1614 = vmatpush3.msra.mxu1 %v783_v9  ;;  %v1166_v33 = vld [vmem:[%s2318_s5] sm:$0xff]  ;;  %v1087_v44 = vld [vmem:[#allocation9] sm:$0xff] }
  0x63   : > { %1601 = vmatpush3.msra.mxu0 %v698_v4  ;;  %1629 = vmatprep.subr.mxu1 %v1945_v0  ;;  %v2243_v34 = vld [vmem:[%s2314_s1] sm:$0xff]  ;;  %v1561_v1 = vld [vmem:[#allocation11] ss:$0 sm:$0xff]  ;;  %v1949_v4 = vmov 0  }
  0x64   : > { %1602 = vmatprep.subr.mxu0 %v1945_v0  ;;  %v885_v35 = vmul.f32 %v2243_v34, %v2243_v34  ;;  %v1555_v37 = vld [vmem:[%s2325_s12] ss:$0 sm:$0xff]  ;;  %1757 = vset.pattern.permute.xlu1 %v1949_v4 }
  0x65   : > { %1603 = vmatpush3.msra.mxu0 %v697_v5  ;;  %v1088_v43 = vld [vmem:[#allocation9 + $0x8] sm:$0xff]  ;;  %1758 = vset.pattern.permute.xlu0 %v1949_v4  ;;  %v1255_v5 = vld [vmem:[#allocation4] sm:$0xff]  ;;  %s682_s4 = scalar_lea.vmem %s2350_s29, %s1551_s25 }
  0x66   : > { %1605 = vmatmul.mubr.msk.f32.vlgmr.msra.gmra.mxu0 %vm708_vm1, %v694_v6  ;;  %1618 = vmatprep.subr.mxu0 %v1945_v0  ;;  %v886_v36 = vsel %vm708_vm1, %v885_v35, 0.0  ;;  %v696_v46 = vld [vmem:[%s2348_s26] sm:$0xff]  ;;  %s689_s21 = scalar_lea.vmem %s2351_s20, %s1551_s25 }
  0x67   : > { %1626 = vmatprep.mubr.msk.f32.mxu0 %vm1946_vm0, %v1945_v0  ;;  %1619 = vmatpush3.msra.mxu0 %v914_v21 }
  0x68   : > { %1620 = vmatprep.subr.mxu0 %v1945_v0 }
  0x69   : > { %1621 = vmatpush3.msra.mxu0 %v913_v22 }
  0x6a   : > { %1622 = vmatprep.subr.mxu0 %v1945_v0 }
  0x6b   : > { %1623 = vmatpush3.msra.mxu0 %v912_v23 }
  0x6c   : > { %1624 = vmatprep.subr.mxu0 %v1945_v0 }
  0x6d   : > { %1625 = vmatpush3.msra.mxu0 %v911_v24 }
  0x6e   : > { %1640 = vmatprep.subr.mxu0 %v1945_v0 }
 0x126   : > { %v778_v11 = vpop.f32.mrf.mxu0 }
 0x127   : > { %v779_v12 = vadd.f32 %v1553_v10, %v778_v11 }
 0x128   : > { %v1606_v13 = vpop.f32.mrf.mxu0 }
 0x129   : > { %v782_v14 = vmul.f32 %v779_v12, %v694_v6  ;;  %v896_v12 = vmul.f32 %v696_v46, %v696_v46 }
 0x12b   : > { %1616 = vmatmul.mubr.msk.f32.vlgmr.msra.gmra.mxu1 %vm708_vm1, %v782_v14  ;;  %v867_v15 = vmul.f32 %v782_v14, %v782_v14 }
 0x12c   : > { %1637 = vmatprep.mubr.msk.f32.mxu1 %vm1946_vm0, %v1945_v0  ;;  %1630 = vmatpush3.msra.mxu1 %v991_v17 }
 0x12d   : > { %v868_v16 = vsel %vm708_vm1, %v867_v15, 0.0  ;;  %1631 = vmatprep.subr.mxu1 %v1945_v0 }
 0x12e   : > { %869 = vadd.xlane.f32.xlu0 %v868_v16  ;;  %1632 = vmatpush3.msra.mxu1 %v990_v18 }
 0x12f   : > { %1633 = vmatprep.subr.mxu1 %v1945_v0 }
 0x130   : > { %1634 = vmatpush3.msra.mxu1 %v989_v19 }
 0x131   : > { %1635 = vmatprep.subr.mxu1 %v1945_v0 }
 0x132   : > { %1636 = vmatpush3.msra.mxu1 %v988_v20 }
 0x133   : > { %1651 = vmatprep.subr.mxu1 %v1945_v0 }
 0x1b7   : > { %v870_v25 = vpop.xlane.xlu0 %869 }
 0x1b8   : > { %v871_v26 = vmax.f32 %v870_v25, 1e-08 }
 0x1ba   : > { %1759 = vrsqrt.f32 %v871_v26 }
 0x1c7   : > { %v1760_v27 = vpop.eup %1759 }
 0x1c8   : > { %v2214_v28 = vmul.f32 %v1760_v27, %v782_v14  ;;  %v897_v14 = vsel %vm879_vm2, %v896_v12, 0.0  ;;  %v1079_v27 = vld [vmem:[%s2349_s28] sm:$0xff] }
 0x1ca   : > { %876 = vrot.lane.b32.xlu0 %v2214_v28, %s1947_s27  ;;  %1638 = vmatmul.mubr.msk.f32.vlgmr.msra.gmra.mxu1 %vm708_vm1, %v2214_v28 }
 0x1cb   : > { %1652 = vmatpush3.msra.mxu1 %v1170_v29  ;;  %1661 = vmatprep.mubr.msk.f32.mxu1 %vm1946_vm0, %v1945_v0 }
 0x1cc   : > { %1653 = vmatprep.subr.mxu1 %v1945_v0 }
 0x1cd   : > { %1654 = vmatpush3.msra.mxu1 %v1169_v30 }
 0x1ce   : > { %1655 = vmatprep.subr.mxu1 %v1945_v0 }
 0x1cf   : > { %1656 = vmatpush3.msra.mxu1 %v1168_v31 }
 0x1d0   : > { %1657 = vmatprep.subr.mxu1 %v1945_v0 }
 0x1d1   : > { %1658 = vmatpush3.msra.mxu1 %v1167_v32 }
 0x1d2   : > { %1659 = vmatprep.subr.mxu1 %v1945_v0 }
 0x1d3   : > { %1660 = vmatpush3.msra.mxu1 %v1166_v33 }
 0x1e9   : > { %887 = vadd.xlane.f32.xlu0 %v886_v36 }
 0x1eb   : > { %v863_v38 = vpop.f32.mrf.mxu1 }
 0x1ec   : > { %v2251_v39 = vadd.f32 %v1555_v37, %v863_v38 }
 0x1ed   : > { %v1617_v41 = vpop.f32.mrf.mxu1 }
 0x1ee   : > { %874 = vst.msk [vmem:[#allocation2] sm:$0xff] %vm708_vm1, %v2251_v39  ;;  %1627 = vmatmul.mubr.msk.f32.vlgmr.msra.gmra.mxu0 %vm708_vm1, %v2251_v39  ;;  %v892_v15 = vmul.f32 %v2251_v39, %v2243_v34 }
 0x1ef   : > { %1641 = vmatpush3.msra.mxu0 %v1090_v40  ;;  %1648 = vmatprep.mubr.msk.f32.mxu0 %vm1946_vm0, %v1945_v0 }
 0x1f0   : > { %1642 = vmatprep.subr.mxu0 %v1945_v0  ;;  %v893_v16 = vsel %vm708_vm1, %v892_v15, 0.0 }
 0x1f1   : > { %1643 = vmatpush3.msra.mxu0 %v1089_v42 }
 0x1f2   : > { %1644 = vmatprep.subr.mxu0 %v1945_v0 }
 0x1f3   : > { %1645 = vmatpush3.msra.mxu0 %v1088_v43 }
 0x1f4   : > { %1646 = vmatprep.subr.mxu0 %v1945_v0 }
 0x1f5   : > { %1647 = vmatpush3.msra.mxu0 %v1087_v44  ;;  %v1086_v45 = vld [vmem:[#allocation2] sm:$0xff] }
 0x1f6   : > { %1649 = vmatmul.mubr.msk.f32.vlgmr.msra.gmra.mxu0 %vm708_vm1, %v1086_v45 }
 0x23c   : > { %v877_v47 = vpop.permute.xlu0 %876 }
 0x23d   : > { %v880_v48 = vsel %vm879_vm2, %v696_v46, %v877_v47 }
 0x23e   : > { %v882_v49 = vsel %vm881_vm3, %v880_v48, 0.0 }
 0x23f   : > { %884 = vst.msk [vmem:[#allocation3] sm:$0xff] %vm883_vm4, %v882_v49 }
 0x246   : > { %v1165_v50 = vld [vmem:[#allocation3] sm:$0xff] }
 0x247   : > { %1662 = vmatmul.mubr.msk.f32.vlgmr.msra.gmra.mxu1 %vm883_vm4, %v1165_v50 }
 0x272   : > { %v888_v17 = vpop.xlane.xlu0 %887 }
 0x273   : > { %v889_v18 = vmax.f32 %v888_v17, 1e-08 }
 0x28a   : > { %v1060_v51 = vpop.f32.mrf.mxu1 }
 0x28b   : > { %v1064_v54 = vsub.f32 %v696_v46, %v1060_v51 }
 0x28c   : > { %v1639_v52 = vpop.f32.mrf.mxu1 }
 0x2ae   : > { %v984_v55 = vpop.f32.mrf.mxu0 }
 0x2af   : > { %v1065_v56 = vmul.f32 %v1064_v54, %v984_v55 }
 0x2b0   : > { %v1628_v57 = vpop.f32.mrf.mxu0 }
 0x2b1   : > { %v1066_v58 = vmul.f32 %v1065_v56, %v1064_v54 }
 0x2b3   : > { %v1067_v8 = vsel %vm879_vm2, %v1066_v58, -inf  ;;  %v1080_v30 = vmul.f32 %v1079_v27, %v1066_v58 }
 0x2b5   : > { %v1081_v31 = vsel %vm879_vm2, %v1080_v30, 0.0 }
 0x2b6   : > { %v1161_v59 = vpop.f32.mrf.mxu0 }
 0x2b8   : > { %v1650_v60 = vpop.f32.mrf.mxu0 }
 0x307   : > { %v1241_v61 = vpop.f32.mrf.mxu1 }
 0x308   : > { %v1245_v62 = vmul.f32 %v1241_v61, %v1161_v59 }
 0x309   : > { %v1663_v63 = vpop.f32.mrf.mxu1 }
 0x30a   : > { %v1246_v2 = vmul.f32 %v1245_v62, %v1241_v61 }
 0x30c   : > { %v1254_v3 = vadd.f32 %v1561_v1, %v1246_v2 }
 0x30e   : > { %1256 = vmax.xlane.f32.xlu1 %v1254_v3 }
 0x397   : > { %v1257_v6 = vpop.xlane.xlu1 %1256 }
 0x398   : > { %v1258_v0 = vmax.f32 %v1255_v5, %v1257_v6 }
 0x39a   : > { %v1259_v7 = vsub.f32 %v1255_v5, %v1258_v0  ;;  %1277 = vst.msk [vmem:[#allocation4] sm:$0xff] %vm907_vm5, %v1258_v0  ;;  %1266 = vperm.xlu1 %1757, %v1258_v0  }
 0x39c   : > { %v1260_v32 = vmul.f32 1.442695, %v1259_v7 }
 0x3a1   : > { %v1281_v49 = vld [vmem:[#allocation4] sm:$0xff] }
 0x3be   : > { %1068 = vmax.xlane.f32.xlu1 %v1067_v8 }
 0x415   : > { %v1267_v9 = vpop.permute.xlu1 %1266 }
 0x416   : > { %v1269_v10 = vsub.f32 %v1254_v3, %v1267_v9 }
 0x418   : > { %v1270_v11 = vmul.f32 1.442695, %v1269_v10 }
 0x41a   : > { %1761 = vpow2.f32 %v1270_v11 }
 0x41b   : > { %1763 = vrsqrt.f32 %v889_v18 }
 0x427   : > { %v1762_v13 = vpop.eup %1761 }
 0x428   : > { %1272 = vadd.xlane.f32.xlu0 %v1762_v13  ;;  %v1764_v22 = vpop.eup %1763 }
 0x429   : > { %v891_v23 = vmul.f32 %v1764_v22, %v2243_v34  ;;  %v1262_v34 = vld [vmem:[#allocation5] sm:$0xff] }
 0x42b   : > { %v900_v26 = vmul.f32 %v891_v23, %v2214_v28 }
 0x42c   : > { %898 = vadd.xlane.f32.xlu0 %v897_v14 }
 0x42d   : > { %v901_v29 = vsel %vm708_vm1, %v900_v26, 0.0 }
 0x430   : > { %894 = vadd.xlane.f32.xlu0 %v893_v16 }
 0x447   : > { %v1069_v19 = vpop.xlane.xlu1 %1068 }
 0x448   : > { %v1070_v20 = vsub.f32 %v1066_v58, %v1069_v19 }
 0x44a   : > { %v1071_v21 = vmul.f32 1.442695, %v1070_v20 }
 0x44c   : > { %1765 = vpow2.f32 %v1071_v21 }
 0x44d   : > { %1767 = vpow2.f32 %v1260_v32 }
 0x459   : > { %v1766_v24 = vpop.eup %1765 }
 0x45a   : > { %v1073_v25 = vsel %vm879_vm2, %v1766_v24, 0.0  ;;  %v1768_v33 = vpop.eup %1767 }
 0x45b   : > { %1074 = vadd.xlane.f32.xlu1 %v1073_v25  ;;  %v1263_v35 = vmul.f32 %v1768_v33, %v1262_v34 }
 0x45f   : > { %902 = vadd.xlane.f32.xlu1 %v901_v29 }
 0x463   : > { %1082 = vadd.xlane.f32.xlu1 %v1081_v31 }
 0x4b1   : > { %v1273_v36 = vpop.xlane.xlu0 %1272 }
 0x4b2   : > { %v1274_v37 = vadd.f32 %v1273_v36, %v1263_v35 }
 0x4b4   : > { %1276 = vst.msk [vmem:[#allocation5] sm:$0xff] %vm907_vm5, %v1274_v37 }
 0x4b5   : > { %v899_v38 = vpop.xlane.xlu0 %898 }
 0x4b9   : > { %v895_v42 = vpop.xlane.xlu0 %894 }
 0x4bb   : > { %v1282_v28 = vld [vmem:[#allocation5] sm:$0xff] }
 0x4bc   : > { %1769 = vlog2.f32 %v1282_v28 }
 0x4c9   : > { %v1770_v45 = vpop.eup %1769 }
 0x4ca   : > { %v1284_v46 = vmul.f32 0.6931472, %v1770_v45 }
 0x4cc   : > { %v1285_v51 = vadd.f32 %v1284_v46, %v1281_v49 }
 0x4e4   : > { %v1075_v39 = vpop.xlane.xlu1 %1074 }
 0x4e5   : > { %1771 = vlog2.f32 %v1075_v39 }
 0x4e8   : > { %v903_v40 = vpop.xlane.xlu1 %902 }
 0x4e9   : > { %v904_v41 = vsub.f32 %v899_v38, %v903_v40 }
 0x4eb   : > { %v905_v43 = vmul.f32 %v904_v41, %v895_v42 }
 0x4ec   : > { %v1083_v53 = vpop.xlane.xlu1 %1082 }
 0x4ed   : > { %v906_v44 = vmul.f32 %v905_v43, %v904_v41 }
 0x4ef   : > { %908 = vst.msk [vmem:[#allocation6] sm:$0xff] %vm907_vm5, %v906_v44 }
 0x4f2   : > { %v1772_v47 = vpop.eup %1771 }
 0x4f3   : > { %v1077_v48 = vmul.f32 0.6931472, %v1772_v47 }
 0x4f5   : > { %v1078_v50 = vadd.f32 %v1077_v48, %v1069_v19 }
 0x4f6   : > { %v1286_v52 = vld [vmem:[#allocation6] sm:$0xff] }
 0x4f7   : > { %v1084_v54 = vsub.f32 %v1078_v50, %v1083_v53  ;;  %v1287_v55 = vsub.f32 %v1285_v51, %v1286_v52 }
 0x4f9   : > { %1085 = vst.msk [vmem:[%s689_s21] sm:$0xff] %vm907_vm5, %v1084_v54  ;;  %1288 = vst.msk [vmem:[%s682_s4] sm:$0xff] %vm907_vm5, %v1287_v55 }
 0x4fa PF: > { %s30_s18 = sadd.s32 1, %s1937_s18   ;;  %s2352_s29 = smov %s1921_s30 }
 0x4fb   : > { %p27_p12 = scmp.ge.s32.totalorder %s30_s18, 4   ;;  %s2353_s30 = smov %s1925_s15 }
 0x4fc   : > { %s2354_s15 = smov %s2118_s13  ;;  %s2355_s16 = smov %s1933_s17 }
 0x4fd   : > { %s2356_s17 = smov %s2358_s2  ;;  %29 = sbr.rel (!%p27_p12) target bundleno = 14 (0xe), region = 164 }
 0x502   :  { %1334 = vsyncpa [#allocation8], 1 }
 0x503   :  { %1336 = vsyncpa [#allocation8 + $0x1], 1 }
 0x504   :  { %1337 = vsyncpa [#allocation10], 1 }
 0x505   :  { %1338 = vsyncpa [#allocation13], 1 }

</bundles_post_ra>
